<compile_context>
chip_gen: v6e
topology: v6e:2x2x1
jax: 0.10.0
libtpu: 0.0.40
codegen_flags: <defaults>
</compile_context>

<pallas_src>
import jax
import jax.numpy as jnp
from jax.experimental import pallas as pl
from jax.experimental.pallas import tpu as pltpu


def _make_kernel(K, Kr, L, negative_slope=0.01):
    def kernel(x_ref, w1_ref, b1_ref, w2_ref, b2_ref, sw1_ref, sb1_ref,
               sew2_ref, seb2_ref, fcw_ref, fcb_ref, o_ref):
        x = x_ref[...]                                            # (TM, L) f32

        # forecast_proj1 (MCD conv pre-folded into w1) + LeakyReLU
        h = jnp.dot(x.astype(jnp.bfloat16), w1_ref[...],
                    preferred_element_type=jnp.float32) + b1_ref[...]   # (TM, K*H)
        h = jnp.where(h >= 0, h, negative_slope * h)

        # forecast_proj2 (block-diagonal over the K IMFs)
        y = jnp.dot(h.astype(jnp.bfloat16), w2_ref[...],
                    preferred_element_type=jnp.float32) + b2_ref[...]   # (TM, K*L)

        # SEBlock squeeze (mean over time) fused with the first SE FC:
        #   z_r = ReLU(sum_k mean_l(y_k) * se_w1[k,r] + se_b1[r])
        sw1 = sw1_ref[...]                                        # (Kr, K*L) f32
        z = []
        for r in range(Kr):
            zr = jnp.sum(y * sw1[r], axis=1, keepdims=True) + sb1_ref[r]
            z.append(jnp.maximum(zr, 0.0))                        # (TM, 1)

        # SE excitation FC2 + sigmoid gates, scale, and sum over IMFs.
        acc = None
        for k in range(K):
            gk = seb2_ref[k]
            for r in range(Kr):
                gk = gk + sew2_ref[r, k] * z[r]
            gk = jax.nn.sigmoid(gk)                               # (TM, 1)
            term = gk * y[:, k * L:(k + 1) * L]                   # (TM, L)
            acc = term if acc is None else acc + term

        # forecast_fc
        o_ref[...] = jnp.dot(acc.astype(jnp.bfloat16), fcw_ref[...],
                             preferred_element_type=jnp.float32) + fcb_ref[...]
    return kernel


def _fold_conv_into_proj1(params):
    """Fold the MCD (1,3) zero-padded conv into forecast_proj1 (exact algebra).

    imf_k = cw[k,0]*x_prev + cw[k,1]*x + cw[k,2]*x_next + cb[k]
    imf_k @ W1_k + b1_k == x @ W1eff_k + b1eff_k
    """
    w1 = params["w1"]                       # (K, L, H) f32
    cw = params["conv_w"]                   # (K, 3)
    cb = params["conv_b"]                   # (K,)
    K, _, H = w1.shape
    zero = jnp.zeros((K, 1, H), w1.dtype)
    w1_up = jnp.concatenate([w1[:, 1:, :], zero], axis=1)   # rows shifted up
    w1_dn = jnp.concatenate([zero, w1[:, :-1, :]], axis=1)  # rows shifted down
    w1_eff = (cw[:, 0, None, None] * w1_up
              + cw[:, 1, None, None] * w1
              + cw[:, 2, None, None] * w1_dn)
    b1_eff = params["b1"] + cb[:, None, None] * jnp.sum(w1, axis=1, keepdims=True)
    return w1_eff, b1_eff


@jax.jit
def dpad_forward(x, params):
    """x: (B, C, L) float32 -> (B, C, output_len) float32."""
    B, C, L = x.shape
    M = B * C
    K, _, H = params["w1"].shape
    O = params["fc_w"].shape[1]
    Kr = params["se_w1"].shape[1]

    # Row-tile size: large tiles amortize the ~0.35us/step overhead; small
    # problems use one (8-padded) tile.
    if M >= 512:
        tile_m = 512
    elif M >= 256:
        tile_m = 256
    else:
        tile_m = max(8, ((M + 7) // 8) * 8)
    m_pad = pl.cdiv(M, tile_m) * tile_m

    x2 = x.reshape(M, L)
    if m_pad != M:
        x2 = jnp.pad(x2, ((0, m_pad - M), (0, 0)))

    # ---- one-time weight prep (all lane-dense 2-D operands) ----
    w1_eff, b1_eff = _fold_conv_into_proj1(params)
    w1c = jnp.transpose(w1_eff, (1, 0, 2)).reshape(L, K * H).astype(jnp.bfloat16)
    b1c = b1_eff.reshape(1, K * H)

    eye = jnp.eye(K, dtype=params["w2"].dtype)
    w2bd = (eye[:, None, :, None] * params["w2"][:, :, None, :]
            ).reshape(K * H, K * L).astype(jnp.bfloat16)          # block-diagonal
    b2c = params["b2"].reshape(1, K * L)

    # SE squeeze (1/L average over time) folded with SE FC1: (Kr, K*L)
    sw1 = jnp.repeat(params["se_w1"].T, L, axis=1) / float(L)

    fcw = params["fc_w"].astype(jnp.bfloat16)                     # (L, O)
    fcb = params["fc_b"]                                          # (1, O)

    grid = (m_pad // tile_m,)

    def vfull(shp):
        return pl.BlockSpec(shp, lambda i: (0,) * len(shp))

    def sfull(shp):
        return pl.BlockSpec(shp, lambda i: (0,) * len(shp),
                            memory_space=pltpu.MemorySpace.SMEM)

    out = pl.pallas_call(
        _make_kernel(K, Kr, L),
        out_shape=jax.ShapeDtypeStruct((m_pad, O), jnp.float32),
        grid=grid,
        in_specs=[
            pl.BlockSpec((tile_m, L), lambda i: (i, 0)),   # x rows
            vfull((L, K * H)), vfull((1, K * H)),          # W1cat (bf16), b1cat
            vfull((K * H, K * L)), vfull((1, K * L)),      # W2 block-diag (bf16), b2cat
            vfull((Kr, K * L)),                            # SE squeeze+FC1 mask
            sfull((Kr,)),                                  # se_b1 (SMEM scalars)
            sfull((Kr, K)), sfull((K,)),                   # se_w2, se_b2 (SMEM scalars)
            vfull((L, O)), vfull((1, O)),                  # fc_w (bf16), fc_b
        ],
        out_specs=pl.BlockSpec((tile_m, O), lambda i: (i, 0)),
        compiler_params=pltpu.CompilerParams(
            dimension_semantics=("parallel",),
        ),
    )(x2, w1c, b1c, w2bd, b2c, sw1, params["se_b1"],
      params["se_w2"], params["se_b2"], fcw, fcb)

    return out[:M].reshape(B, C, O)


def dpad_reference(x, params, negative_slope=0.01):
    """Pure-JAX f32 reference in the original module's op order (conv -> per-k
    linears -> SE over the K axis -> weighted sum -> forecast_fc)."""
    B, C, L = x.shape
    M = B * C
    K = params["w1"].shape[0]
    x2 = x.reshape(M, L)
    zcol = jnp.zeros((M, 1), x2.dtype)
    x_prev = jnp.concatenate([zcol, x2[:, :-1]], axis=1)
    x_next = jnp.concatenate([x2[:, 1:], zcol], axis=1)

    def leaky(v):
        return jnp.where(v >= 0, v, negative_slope * v)

    ys, ss = [], []
    for k in range(K):
        imf = (params["conv_w"][k, 0] * x_prev + params["conv_w"][k, 1] * x2
               + params["conv_w"][k, 2] * x_next + params["conv_b"][k])
        h = leaky(imf @ params["w1"][k] + params["b1"][k])
        yk = h @ params["w2"][k] + params["b2"][k]
        ys.append(yk)
        ss.append(jnp.mean(yk, axis=1, keepdims=True))
    s = jnp.concatenate(ss, axis=1)                               # (M, K)
    z = jnp.maximum(s @ params["se_w1"] + params["se_b1"], 0.0)
    g = jax.nn.sigmoid(z @ params["se_w2"] + params["se_b2"])     # (M, K)
    acc = sum(ys[k] * g[:, k:k + 1] for k in range(K))
    y = acc @ params["fc_w"] + params["fc_b"]
    return y.reshape(B, C, -1)


def init_params(key, input_len, enc_hidden, output_len, K_IMP):
    L, H, K = input_len, enc_hidden, K_IMP
    Kr = max(K // 2, 1)
    ks = jax.random.split(key, 12)
    n = lambda k, s: (jax.random.normal(k, s, jnp.float32) * 0.1)
    return {
        "conv_w": n(ks[0], (K, 3)),
        "conv_b": n(ks[1], (K,)),
        "w1": n(ks[2], (K, L, H)),
        "b1": n(ks[3], (K, 1, H)),
        "w2": n(ks[4], (K, H, L)),
        "b2": n(ks[5], (K, 1, L)),
        "se_w1": n(ks[6], (K, Kr)),
        "se_b1": n(ks[7], (Kr,)),
        "se_w2": n(ks[8], (Kr, K)),
        "se_b2": n(ks[9], (K,)),
        "fc_w": n(ks[10], (L, output_len)),
        "fc_b": n(ks[11], (1, output_len)),
    }


if __name__ == "__main__":
    # DPAD(input_dim=4, input_len=16, num_levels=1, dropout=0.1,
    #      enc_hidden=32, dec_hidden=32, output_len=8, K_IMP=4)
    B, C, L = 2, 4, 16
    enc_hidden, output_len, K_IMP = 32, 8, 4

    key = jax.random.PRNGKey(0)
    kx, kp = jax.random.split(key)
    x = jax.random.normal(kx, (B, C, L), jnp.float32)
    params = init_params(kp, L, enc_hidden, output_len, K_IMP)

    y = dpad_forward(x, params)
    y = jax.block_until_ready(y)

    y_ref = dpad_reference(x, params)
    assert y.shape == (B, C, output_len)
    # Tolerance accounts for bf16 MXU operands + conv/squeeze algebraic refolding.
    max_err = float(jnp.max(jnp.abs(y - y_ref)))
    assert jnp.allclose(y, y_ref, atol=2e-2, rtol=2e-2), f"max abs err {max_err}"
    print("KERNEL_OK")
</pallas_src>

<mosaic_0001>
module attributes {stable_mosaic.version = 11 : i64} {
  func.func @kernel(%arg0: i32, %arg1: memref<8x16xf32, #tpu.memory_space<vmem>>, %arg2: memref<16x128xbf16, #tpu.memory_space<vmem>>, %arg3: memref<1x128xf32, #tpu.memory_space<vmem>>, %arg4: memref<128x64xbf16, #tpu.memory_space<vmem>>, %arg5: memref<1x64xf32, #tpu.memory_space<vmem>>, %arg6: memref<2x64xf32, #tpu.memory_space<vmem>>, %arg7: memref<2xf32, #tpu.memory_space<smem>>, %arg8: memref<2x4xf32, #tpu.memory_space<smem>>, %arg9: memref<4xf32, #tpu.memory_space<smem>>, %arg10: memref<16x8xbf16, #tpu.memory_space<vmem>>, %arg11: memref<1x8xf32, #tpu.memory_space<vmem>>, %arg12: memref<8x8xf32, #tpu.memory_space<vmem>>) attributes {dimension_semantics = [#tpu.dimension_semantics<parallel>], iteration_bounds = array<i64: 1>, scalar_prefetch = 0 : i64, scratch_operands = 0 : i64, tpu.core_type = #tpu.core_type<tc>, window_params = [{transform_indices = @transform_0, window_bounds = array<i64: 8, 16>}, {pipeline_mode = #tpu.pipeline_mode<synchronous>, transform_indices = @transform_1, window_bounds = array<i64: 16, 128>}, {pipeline_mode = #tpu.pipeline_mode<synchronous>, transform_indices = @transform_2, window_bounds = array<i64: 1, 128>}, {pipeline_mode = #tpu.pipeline_mode<synchronous>, transform_indices = @transform_3, window_bounds = array<i64: 128, 64>}, {pipeline_mode = #tpu.pipeline_mode<synchronous>, transform_indices = @transform_4, window_bounds = array<i64: 1, 64>}, {pipeline_mode = #tpu.pipeline_mode<synchronous>, transform_indices = @transform_5, window_bounds = array<i64: 2, 64>}, {transform_indices = @transform_6, window_bounds = array<i64: 2>}, {transform_indices = @transform_7, window_bounds = array<i64: 2, 4>}, {transform_indices = @transform_8, window_bounds = array<i64: 4>}, {pipeline_mode = #tpu.pipeline_mode<synchronous>, transform_indices = @transform_9, window_bounds = array<i64: 16, 8>}, {pipeline_mode = #tpu.pipeline_mode<synchronous>, transform_indices = @transform_10, window_bounds = array<i64: 1, 8>}, {transform_indices = @transform_11, window_bounds = array<i64: 8, 8>}]} {
    %c0 = arith.constant 0 : index
    %c0_0 = arith.constant 0 : index
    %0 = vector.load %arg1[%c0, %c0_0] : memref<8x16xf32, #tpu.memory_space<vmem>>, vector<8x16xf32>
    %1 = arith.truncf %0 : vector<8x16xf32> to vector<8x16xbf16>
    %c0_1 = arith.constant 0 : index
    %c0_2 = arith.constant 0 : index
    %2 = vector.load %arg2[%c0_1, %c0_2] : memref<16x128xbf16, #tpu.memory_space<vmem>>, vector<16x128xbf16>
    %cst = arith.constant dense<0.000000e+00> : vector<8x128xf32>
    %3 = tpu.matmul %1, %2, %cst {dimension_numbers = #tpu.dot_dimension_numbers<[1], [0], [0], [1], [0, 0, 1, 1], [], []>} : vector<8x16xbf16>, vector<16x128xbf16>, vector<8x128xf32> -> vector<8x128xf32>
    %c0_3 = arith.constant 0 : index
    %c0_4 = arith.constant 0 : index
    %4 = vector.load %arg3[%c0_3, %c0_4] : memref<1x128xf32, #tpu.memory_space<vmem>>, vector<1x128xf32>
    %5 = vector.broadcast %4 : vector<1x128xf32> to vector<8x128xf32>
    %6 = arith.addf %3, %5 : vector<8x128xf32>
    %cst_5 = arith.constant 0.000000e+00 : f32
    %7 = vector.broadcast %cst_5 : f32 to vector<8x128xf32>
    %8 = arith.cmpf oge, %6, %7 : vector<8x128xf32>
    %cst_6 = arith.constant 0.00999999977 : f32
    %9 = vector.broadcast %cst_6 : f32 to vector<8x128xf32>
    %10 = arith.mulf %9, %6 : vector<8x128xf32>
    %11 = arith.select %8, %6, %10 : vector<8x128xi1>, vector<8x128xf32>
    %12 = arith.truncf %11 : vector<8x128xf32> to vector<8x128xbf16>
    %c0_7 = arith.constant 0 : index
    %c0_8 = arith.constant 0 : index
    %13 = vector.load %arg4[%c0_7, %c0_8] : memref<128x64xbf16, #tpu.memory_space<vmem>>, vector<128x64xbf16>
    %cst_9 = arith.constant dense<0.000000e+00> : vector<8x64xf32>
    %14 = tpu.matmul %12, %13, %cst_9 {dimension_numbers = #tpu.dot_dimension_numbers<[1], [0], [0], [1], [0, 0, 1, 1], [], []>} : vector<8x128xbf16>, vector<128x64xbf16>, vector<8x64xf32> -> vector<8x64xf32>
    %c0_10 = arith.constant 0 : index
    %c0_11 = arith.constant 0 : index
    %15 = vector.load %arg5[%c0_10, %c0_11] : memref<1x64xf32, #tpu.memory_space<vmem>>, vector<1x64xf32>
    %16 = vector.broadcast %15 : vector<1x64xf32> to vector<8x64xf32>
    %17 = arith.addf %14, %16 : vector<8x64xf32>
    %c0_12 = arith.constant 0 : index
    %c0_13 = arith.constant 0 : index
    %18 = vector.load %arg6[%c0_12, %c0_13] : memref<2x64xf32, #tpu.memory_space<vmem>>, vector<2x64xf32>
    %19 = vector.extract_strided_slice %18 {offsets = [0, 0], sizes = [1, 64], strides = [1, 1]} : vector<2x64xf32> to vector<1x64xf32>
    %20 = vector.shape_cast %19 : vector<1x64xf32> to vector<64xf32>
    %21 = vector.shape_cast %20 : vector<64xf32> to vector<1x64xf32>
    %22 = vector.broadcast %21 : vector<1x64xf32> to vector<8x64xf32>
    %23 = arith.mulf %17, %22 : vector<8x64xf32>
    %cst_14 = arith.constant dense<0.000000e+00> : vector<8xf32>
    %24 = vector.multi_reduction <add>, %23, %cst_14 [1] : vector<8x64xf32> to vector<8xf32>
    %25 = vector.shape_cast %24 : vector<8xf32> to vector<8x1xf32>
    %c0_15 = arith.constant 0 : index
    %26 = memref.load %arg7[%c0_15] : memref<2xf32, #tpu.memory_space<smem>>
    %27 = vector.broadcast %26 : f32 to vector<8x1xf32>
    %28 = arith.addf %25, %27 : vector<8x1xf32>
    %cst_16 = arith.constant 0.000000e+00 : f32
    %29 = vector.broadcast %cst_16 : f32 to vector<8x1xf32>
    %30 = arith.maximumf %28, %29 : vector<8x1xf32>
    %31 = vector.extract_strided_slice %18 {offsets = [1, 0], sizes = [1, 64], strides = [1, 1]} : vector<2x64xf32> to vector<1x64xf32>
    %32 = vector.shape_cast %31 : vector<1x64xf32> to vector<64xf32>
    %33 = vector.shape_cast %32 : vector<64xf32> to vector<1x64xf32>
    %34 = vector.broadcast %33 : vector<1x64xf32> to vector<8x64xf32>
    %35 = arith.mulf %17, %34 : vector<8x64xf32>
    %cst_17 = arith.constant dense<0.000000e+00> : vector<8xf32>
    %36 = vector.multi_reduction <add>, %35, %cst_17 [1] : vector<8x64xf32> to vector<8xf32>
    %37 = vector.shape_cast %36 : vector<8xf32> to vector<8x1xf32>
    %c1 = arith.constant 1 : index
    %38 = memref.load %arg7[%c1] : memref<2xf32, #tpu.memory_space<smem>>
    %39 = vector.broadcast %38 : f32 to vector<8x1xf32>
    %40 = arith.addf %37, %39 : vector<8x1xf32>
    %cst_18 = arith.constant 0.000000e+00 : f32
    %41 = vector.broadcast %cst_18 : f32 to vector<8x1xf32>
    %42 = arith.maximumf %40, %41 : vector<8x1xf32>
    %c0_19 = arith.constant 0 : index
    %43 = memref.load %arg9[%c0_19] : memref<4xf32, #tpu.memory_space<smem>>
    %c0_20 = arith.constant 0 : index
    %c0_21 = arith.constant 0 : index
    %44 = memref.load %arg8[%c0_20, %c0_21] : memref<2x4xf32, #tpu.memory_space<smem>>
    %45 = vector.broadcast %44 : f32 to vector<8x1xf32>
    %46 = arith.mulf %45, %30 : vector<8x1xf32>
    %47 = vector.broadcast %43 : f32 to vector<8x1xf32>
    %48 = arith.addf %47, %46 : vector<8x1xf32>
    %c1_22 = arith.constant 1 : index
    %c0_23 = arith.constant 0 : index
    %49 = memref.load %arg8[%c1_22, %c0_23] : memref<2x4xf32, #tpu.memory_space<smem>>
    %50 = vector.broadcast %49 : f32 to vector<8x1xf32>
    %51 = arith.mulf %50, %42 : vector<8x1xf32>
    %52 = arith.addf %48, %51 : vector<8x1xf32>
    %53 = arith.negf %52 : vector<8x1xf32>
    %54 = math.exp %53 : vector<8x1xf32>
    %cst_24 = arith.constant 1.000000e+00 : f32
    %55 = vector.broadcast %cst_24 : f32 to vector<8x1xf32>
    %56 = arith.addf %55, %54 : vector<8x1xf32>
    %57 = arith.divf %55, %56 : vector<8x1xf32>
    %58 = vector.extract_strided_slice %17 {offsets = [0, 0], sizes = [8, 16], strides = [1, 1]} : vector<8x64xf32> to vector<8x16xf32>
    %59 = vector.broadcast %57 : vector<8x1xf32> to vector<8x16xf32>
    %60 = arith.mulf %59, %58 : vector<8x16xf32>
    %c1_25 = arith.constant 1 : index
    %61 = memref.load %arg9[%c1_25] : memref<4xf32, #tpu.memory_space<smem>>
    %c0_26 = arith.constant 0 : index
    %c1_27 = arith.constant 1 : index
    %62 = memref.load %arg8[%c0_26, %c1_27] : memref<2x4xf32, #tpu.memory_space<smem>>
    %63 = vector.broadcast %62 : f32 to vector<8x1xf32>
    %64 = arith.mulf %63, %30 : vector<8x1xf32>
    %65 = vector.broadcast %61 : f32 to vector<8x1xf32>
    %66 = arith.addf %65, %64 : vector<8x1xf32>
    %c1_28 = arith.constant 1 : index
    %c1_29 = arith.constant 1 : index
    %67 = memref.load %arg8[%c1_28, %c1_29] : memref<2x4xf32, #tpu.memory_space<smem>>
    %68 = vector.broadcast %67 : f32 to vector<8x1xf32>
    %69 = arith.mulf %68, %42 : vector<8x1xf32>
    %70 = arith.addf %66, %69 : vector<8x1xf32>
    %71 = arith.negf %70 : vector<8x1xf32>
    %72 = math.exp %71 : vector<8x1xf32>
    %cst_30 = arith.constant 1.000000e+00 : f32
    %73 = vector.broadcast %cst_30 : f32 to vector<8x1xf32>
    %74 = arith.addf %73, %72 : vector<8x1xf32>
    %75 = arith.divf %73, %74 : vector<8x1xf32>
    %76 = vector.extract_strided_slice %17 {offsets = [0, 16], sizes = [8, 16], strides = [1, 1]} : vector<8x64xf32> to vector<8x16xf32>
    %77 = vector.broadcast %75 : vector<8x1xf32> to vector<8x16xf32>
    %78 = arith.mulf %77, %76 : vector<8x16xf32>
    %79 = arith.addf %60, %78 : vector<8x16xf32>
    %c2 = arith.constant 2 : index
    %80 = memref.load %arg9[%c2] : memref<4xf32, #tpu.memory_space<smem>>
    %c0_31 = arith.constant 0 : index
    %c2_32 = arith.constant 2 : index
    %81 = memref.load %arg8[%c0_31, %c2_32] : memref<2x4xf32, #tpu.memory_space<smem>>
    %82 = vector.broadcast %81 : f32 to vector<8x1xf32>
    %83 = arith.mulf %82, %30 : vector<8x1xf32>
    %84 = vector.broadcast %80 : f32 to vector<8x1xf32>
    %85 = arith.addf %84, %83 : vector<8x1xf32>
    %c1_33 = arith.constant 1 : index
    %c2_34 = arith.constant 2 : index
    %86 = memref.load %arg8[%c1_33, %c2_34] : memref<2x4xf32, #tpu.memory_space<smem>>
    %87 = vector.broadcast %86 : f32 to vector<8x1xf32>
    %88 = arith.mulf %87, %42 : vector<8x1xf32>
    %89 = arith.addf %85, %88 : vector<8x1xf32>
    %90 = arith.negf %89 : vector<8x1xf32>
    %91 = math.exp %90 : vector<8x1xf32>
    %cst_35 = arith.constant 1.000000e+00 : f32
    %92 = vector.broadcast %cst_35 : f32 to vector<8x1xf32>
    %93 = arith.addf %92, %91 : vector<8x1xf32>
    %94 = arith.divf %92, %93 : vector<8x1xf32>
    %95 = vector.extract_strided_slice %17 {offsets = [0, 32], sizes = [8, 16], strides = [1, 1]} : vector<8x64xf32> to vector<8x16xf32>
    %96 = vector.broadcast %94 : vector<8x1xf32> to vector<8x16xf32>
    %97 = arith.mulf %96, %95 : vector<8x16xf32>
    %98 = arith.addf %79, %97 : vector<8x16xf32>
    %c3 = arith.constant 3 : index
    %99 = memref.load %arg9[%c3] : memref<4xf32, #tpu.memory_space<smem>>
    %c0_36 = arith.constant 0 : index
    %c3_37 = arith.constant 3 : index
    %100 = memref.load %arg8[%c0_36, %c3_37] : memref<2x4xf32, #tpu.memory_space<smem>>
    %101 = vector.broadcast %100 : f32 to vector<8x1xf32>
    %102 = arith.mulf %101, %30 : vector<8x1xf32>
    %103 = vector.broadcast %99 : f32 to vector<8x1xf32>
    %104 = arith.addf %103, %102 : vector<8x1xf32>
    %c1_38 = arith.constant 1 : index
    %c3_39 = arith.constant 3 : index
    %105 = memref.load %arg8[%c1_38, %c3_39] : memref<2x4xf32, #tpu.memory_space<smem>>
    %106 = vector.broadcast %105 : f32 to vector<8x1xf32>
    %107 = arith.mulf %106, %42 : vector<8x1xf32>
    %108 = arith.addf %104, %107 : vector<8x1xf32>
    %109 = arith.negf %108 : vector<8x1xf32>
    %110 = math.exp %109 : vector<8x1xf32>
    %cst_40 = arith.constant 1.000000e+00 : f32
    %111 = vector.broadcast %cst_40 : f32 to vector<8x1xf32>
    %112 = arith.addf %111, %110 : vector<8x1xf32>
    %113 = arith.divf %111, %112 : vector<8x1xf32>
    %114 = vector.extract_strided_slice %17 {offsets = [0, 48], sizes = [8, 16], strides = [1, 1]} : vector<8x64xf32> to vector<8x16xf32>
    %115 = vector.broadcast %113 : vector<8x1xf32> to vector<8x16xf32>
    %116 = arith.mulf %115, %114 : vector<8x16xf32>
    %117 = arith.addf %98, %116 : vector<8x16xf32>
    %118 = arith.truncf %117 : vector<8x16xf32> to vector<8x16xbf16>
    %c0_41 = arith.constant 0 : index
    %c0_42 = arith.constant 0 : index
    %119 = vector.load %arg10[%c0_41, %c0_42] : memref<16x8xbf16, #tpu.memory_space<vmem>>, vector<16x8xbf16>
    %cst_43 = arith.constant dense<0.000000e+00> : vector<8x8xf32>
    %120 = tpu.matmul %118, %119, %cst_43 {dimension_numbers = #tpu.dot_dimension_numbers<[1], [0], [0], [1], [0, 0, 1, 1], [], []>} : vector<8x16xbf16>, vector<16x8xbf16>, vector<8x8xf32> -> vector<8x8xf32>
    %c0_44 = arith.constant 0 : index
    %c0_45 = arith.constant 0 : index
    %121 = vector.load %arg11[%c0_44, %c0_45] : memref<1x8xf32, #tpu.memory_space<vmem>>, vector<1x8xf32>
    %122 = vector.broadcast %121 : vector<1x8xf32> to vector<8x8xf32>
    %123 = arith.addf %120, %122 : vector<8x8xf32>
    %c0_46 = arith.constant 0 : index
    %c0_47 = arith.constant 0 : index
    %124 = vector.load %arg12[%c0_46, %c0_47] : memref<8x8xf32, #tpu.memory_space<vmem>>, vector<8x8xf32>
    tpu.vector_store %arg12[%c0_46, %c0_47], %123 {strides = array<i32>} : memref<8x8xf32, #tpu.memory_space<vmem>>, vector<8x8xf32>,
    return
  }
  func.func @transform_0(%arg0: i32) -> (i32, i32) {
    %c0_i32 = arith.constant 0 : i32
    %c0_i32_0 = arith.constant 0 : i32
    return %arg0, %c0_i32 : i32, i32
  }
  func.func @transform_1(%arg0: i32) -> (i32, i32) {
    %c0_i32 = arith.constant 0 : i32
    %c0_i32_0 = arith.constant 0 : i32
    %c0_i32_1 = arith.constant 0 : i32
    return %c0_i32, %c0_i32_0 : i32, i32
  }
  func.func @transform_2(%arg0: i32) -> (i32, i32) {
    %c0_i32 = arith.constant 0 : i32
    %c0_i32_0 = arith.constant 0 : i32
    %c0_i32_1 = arith.constant 0 : i32
    return %c0_i32, %c0_i32_0 : i32, i32
  }
  func.func @transform_3(%arg0: i32) -> (i32, i32) {
    %c0_i32 = arith.constant 0 : i32
    %c0_i32_0 = arith.constant 0 : i32
    %c0_i32_1 = arith.constant 0 : i32
    return %c0_i32, %c0_i32_0 : i32, i32
  }
  func.func @transform_4(%arg0: i32) -> (i32, i32) {
    %c0_i32 = arith.constant 0 : i32
    %c0_i32_0 = arith.constant 0 : i32
    %c0_i32_1 = arith.constant 0 : i32
    return %c0_i32, %c0_i32_0 : i32, i32
  }
  func.func @transform_5(%arg0: i32) -> (i32, i32) {
    %c0_i32 = arith.constant 0 : i32
    %c0_i32_0 = arith.constant 0 : i32
    %c0_i32_1 = arith.constant 0 : i32
    return %c0_i32, %c0_i32_0 : i32, i32
  }
  func.func @transform_6(%arg0: i32) -> i32 {
    %c0_i32 = arith.constant 0 : i32
    %c0_i32_0 = arith.constant 0 : i32
    return %c0_i32 : i32
  }
  func.func @transform_7(%arg0: i32) -> (i32, i32) {
    %c0_i32 = arith.constant 0 : i32
    %c0_i32_0 = arith.constant 0 : i32
    %c0_i32_1 = arith.constant 0 : i32
    return %c0_i32, %c0_i32_0 : i32, i32
  }
  func.func @transform_8(%arg0: i32) -> i32 {
    %c0_i32 = arith.constant 0 : i32
    %c0_i32_0 = arith.constant 0 : i32
    return %c0_i32 : i32
  }
  func.func @transform_9(%arg0: i32) -> (i32, i32) {
    %c0_i32 = arith.constant 0 : i32
    %c0_i32_0 = arith.constant 0 : i32
    %c0_i32_1 = arith.constant 0 : i32
    return %c0_i32, %c0_i32_0 : i32, i32
  }
  func.func @transform_10(%arg0: i32) -> (i32, i32) {
    %c0_i32 = arith.constant 0 : i32
    %c0_i32_0 = arith.constant 0 : i32
    %c0_i32_1 = arith.constant 0 : i32
    return %c0_i32, %c0_i32_0 : i32, i32
  }
  func.func @transform_11(%arg0: i32) -> (i32, i32) {
    %c0_i32 = arith.constant 0 : i32
    %c0_i32_0 = arith.constant 0 : i32
    return %arg0, %c0_i32 : i32, i32
  }
}

</mosaic_0001>

<bundles_post_ra>
// kernel: dpad_forward.1
= control target key start
LH: loop header
LB: loop body
LE: loop exit
PB: predicated region body
PF: predicated region fallthrough
CT: control target
= control target key end

     0   :  { %16 = vsyncpa [#allocation4], 0  ;;  %s770_s0 = inlined_call_operand.vmem [shape: f32[8,16], index: 0, kind: input, shape index: {}]   ;;  %s771_s1 = inlined_call_operand.vmem [shape: bf16[16,128], index: 1, kind: input, shape index: {}]   ;;  %s772_s2 = inlined_call_operand.vmem [shape: f32[1,128], index: 2, kind: input, shape index: {}]   ;;  %s773_s3 = inlined_call_operand.vmem [shape: bf16[128,64], index: 3, kind: input, shape index: {}]   ;;  %s774_s4 = inlined_call_operand.vmem [shape: f32[1,64], index: 4, kind: input, shape index: {}]   ;;  %s775_s5 = inlined_call_operand.vmem [shape: f32[2,64], index: 5, kind: input, shape index: {}]   ;;  %s776_s6 = inlined_call_operand.vmem [shape: f32[2], index: 6, kind: input, shape index: {}]   ;;  %s777_s7 = inlined_call_operand.vmem [shape: f32[2,4], index: 7, kind: input, shape index: {}]   ;;  %s778_s8 = inlined_call_operand.vmem [shape: f32[4], index: 8, kind: input, shape index: {}]   ;;  %s779_s9 = inlined_call_operand.vmem [shape: bf16[16,8], index: 9, kind: input, shape index: {}]   ;;  %s780_s10 = inlined_call_operand.vmem [shape: f32[1,8], index: 10, kind: input, shape index: {}]   ;;  %s781_s11 = inlined_call_operand.hbm [shape: f32[8,8], index: 11, kind: output, shape index: {}]  }
   0x1   :  { %17 = vsyncpa [#allocation6], 0  ;;  %s47_s19 = sshll.u32 %s777_s7, 4  ;;  %s48_s19 = int_to_ptr.vmem [resolvable:$true] %s47_s19 }
   0x2   :  { %18 = vsyncpa [#allocation3], 0  ;;  %s37_s22 = sshll.u32 %s776_s6, 4  ;;  %s548_s23 = scalar_lea.vmem %s48_s19, 32  ;;  %s38_s22 = int_to_ptr.vmem [resolvable:$true] %s37_s22 }
   0x3   :  { %p549_p0 = scmp.ne.s32.totalorder %s48_s19, %s548_s23  ;;  %p553_p1 = scmp.lt.s32.totalorder %s48_s19, %s48_s19 }
   0x4   :  { %p554_p2 = scmp.lt.s32.totalorder %s548_s23, %s548_s23 }
   0x6   :  { %p555_p3 = por %p554_p2, %p553_p1 }
   0x8   :  { %p556_p4 = pnand %p555_p3, %p549_p0 }
   0xa   :  { %559 = shalt.err (!%p556_p4)
}
   0xb   :  { %s610_s24 = smov [#allocation5]   ;;  %s560_s25 = scalar_lea.vmem %s38_s22, 16 }
   0xc   :  { %50 = dma.vmem_to_smem %s48_s19, 32, %s610_s24, [#allocation6]  }
   0xd   :  { %p561_p5 = scmp.ne.s32.totalorder %s38_s22, %s560_s25  ;;  %p565_p6 = scmp.lt.s32.totalorder %s38_s22, %s38_s22 }
   0xe   :  { %p566_p7 = scmp.lt.s32.totalorder %s560_s25, %s560_s25 }
  0x10   :  { %p567_p8 = por %p566_p7, %p565_p6 }
  0x12   :  { %p568_p9 = pnand %p567_p8, %p561_p5 }
  0x14   :  { %571 = shalt.err (!%p568_p9)
}
  0x15   :  { %s611_s7 = smov [#allocation2]   ;;  %s57_s27 = sshll.u32 %s778_s8, 4  ;;  %s58_s27 = int_to_ptr.vmem [resolvable:$true] %s57_s27 }
  0x16   :  { %40 = dma.vmem_to_smem %s38_s22, 16, %s611_s7, [#allocation4]  }
  0x17   :  { %s572_s28 = scalar_lea.vmem %s58_s27, 16  ;;  %p577_p11 = scmp.lt.s32.totalorder %s58_s27, %s58_s27 }
  0x18   :  { %p573_p10 = scmp.ne.s32.totalorder %s58_s27, %s572_s28  ;;  %p578_p12 = scmp.lt.s32.totalorder %s572_s28, %s572_s28 }
  0x1a   :  { %p579_p13 = por %p578_p12, %p577_p11 }
  0x1c   :  { %p580_p0 = pnand %p579_p13, %p573_p10 }
  0x1e   :  { %583 = shalt.err (!%p580_p0)
}
  0x1f   :  { %s612_s29 = smov [#allocation7]  }
  0x20   :  { %60 = dma.vmem_to_smem %s58_s27, 16, %s612_s29, [#allocation6]  }
  0x21   :  { %604 = dma.done.wait [#allocation4], 16  }
  0x22   :  { %605 = vsyncadd [#allocation4], 4294967280 }
  0x23   :  { %606 = dma.done.wait [#allocation6], 48  }
  0x24   :  { %607 = vsyncadd [#allocation6], 4294967248 }
  0x25   :  { %74 = sfence }
  0x26   :  { %v522_v0 = vld [vmem:[%s771_s1] sm:$0xff]   ;;  %v613_v1 = vmov 0.0   ;;  %vm93_vm0 = vcmask 130048   ;;  %v523_v3 = vld [vmem:[%s773_s3 + $0x38] sm:$0xff]   ;;  %vm614_vm1 = vmmov 0   ;;  %v524_v5 = vld [vmem:[%s773_s3 + $0x30] sm:$0xff]   ;;  %v253_v21 = vlaneseq }
  0x27   :  { %481 = vmatprep.subr.bf16.mxu0 %v613_v1  ;;  %v76_v2 = vld [vmem:[%s770_s0] sm:$0xff]  ;;  %487 = vmatprep.subr.bf16.mxu1 %v613_v1  ;;  %v525_v6 = vld [vmem:[%s773_s3 + $0x28] sm:$0xff]   ;;  %v527_v8 = vld [vmem:[%s773_s3 + $0x18] sm:$0xff]   ;;  %vm258_vm3 = vcmask 523264   ;;  %s732_s30 = sld [smem:[#allocation7]]  ;;  %s615_s22 = smov 112  }
  0x28   :  { %482 = vmatpush3.bf16.msra.mxu0 %v522_v0  ;;  %483 = vmatprep.mubr.msk.bf16.mxu0 %vm614_vm1, %v613_v1  ;;  %v77_v4 = vpack.c.bf16 %v76_v2, %v76_v2  ;;  %v526_v7 = vld [vmem:[%s773_s3 + $0x20] sm:$0xff]   ;;  %v528_v9 = vld [vmem:[%s773_s3 + $0x10] sm:$0xff]   ;;  %v529_v10 = vld [vmem:[%s773_s3 + $0x8] sm:$0xff]   ;;  %v254_v22 = vshrl.u32 %v253_v21, 7  ;;  %s734_s12 = sld [smem:[#allocation7 + $0x1]]  ;;  %s616_s23 = smov 80  }
  0x29   :  { %488 = vmatpush3.bf16.msra.mxu1 %v523_v3  ;;  %503 = vmatprep.mubr.msk.bf16.mxu1 %vm614_vm1, %v613_v1  ;;  %v530_v11 = vld [vmem:[%s773_s3] sm:$0xff]   ;;  %s454_s8 = sld [smem:[#allocation5 + $0x1]]  ;;  %s617_s24 = smov 96   ;;  %vm420_vm4 = vcmask 64512  }
  0x2a   :  { %489 = vmatprep.subr.bf16.mxu1 %v613_v1  ;;  %507 = vmatprep.subr.bf16.mxu0 %v613_v1  ;;  %v438_v12 = vld [vmem:[%s772_s2] ss:$0 sm:$0xff]  ;;  %v255_v23 = vsub.s32 0, %v254_v22  ;;  %v268_v25 = vsub.s32 1, %v254_v22  ;;  %s736_s13 = sld [smem:[#allocation7 + $0x2]]  ;;  %s618_s7 = smov [#allocation8]  }
  0x2b   :  { %484 = vmatmul.mubr.msk.bf16.vlgmr.msra.gmra.mxu0 %vm93_vm0, %v77_v4  ;;  %v252_v24 = vld [vmem:[%s775_s5] sm:$0x3]  ;;  %s262_s5 = sld [smem:[#allocation2]]  ;;  %s428_s6 = sshll.u32 %s618_s7, 4  ;;  %s429_s6 = int_to_ptr.vmem [resolvable:$true] %s428_s6 }
  0x2c   :  { %509 = vmatprep.mubr.msk.bf16.mxu0 %vm614_vm1, %v613_v1  ;;  %v441_v26 = vld [vmem:[%s774_s4] ss:$0 sm:$0xff]  ;;  %v256_v27 = vrot.slane %v252_v24, %v255_v23  ;;  %v269_v30 = vrot.slane %v252_v24, %v268_v25  ;;  %s279_s4 = sld [smem:[#allocation5]]  ;;  %s584_s26 = scalar_lea.vmem %s429_s6, 128 }
  0x2d   :  { %490 = vmatpush3.bf16.msra.mxu1 %v524_v5  ;;  %s458_s14 = sld [smem:[#allocation5 + $0x2]]  ;;  %v282_v47 = vstv %s732_s30  ;;  %p585_p1 = scmp.ne.s32.totalorder %s429_s6, %s584_s26 }
  0x2e   :  { %491 = vmatprep.subr.bf16.mxu1 %v613_v1  ;;  %s738_s15 = sld [smem:[#allocation7 + $0x3]]  ;;  %v299_v53 = vstv %s734_s12  ;;  %p589_p2 = scmp.lt.s32.totalorder %s429_s6, %s429_s6 }
  0x2f   :  { %s462_s16 = sld [smem:[#allocation5 + $0x3]]  ;;  %v297_v42 = vstv %s454_s8  ;;  %p590_p3 = scmp.lt.s32.totalorder %s584_s26, %s584_s26 }
  0x30   :  { %s450_s17 = sld [smem:[#allocation2 + $0x1]]  ;;  %v321_v54 = vstv %s736_s13 }
  0x31   :  { %492 = vmatpush3.bf16.msra.mxu1 %v525_v6  ;;  %s740_s0 = sld [smem:[#allocation5 + $0x80]]  ;;  %v263_v38 = vstv %s262_s5  ;;  %p591_p4 = por %p590_p3, %p589_p2 }
  0x32   :  { %493 = vmatprep.subr.bf16.mxu1 %v613_v1  ;;  %s742_s1 = sld [smem:[#allocation5 + $0x81]]  ;;  %v280_v41 = vstv %s279_s4 }
  0x33   :  { %s744_s18 = sld [smem:[#allocation5 + $0x82]]  ;;  %v319_v43 = vstv %s458_s14  ;;  %p592_p5 = pnand %p591_p4, %p585_p1 }
  0x34   :  { %s746_s19 = sld [smem:[#allocation5 + $0x83]]  ;;  %v343_v55 = vstv %s738_s15 }
  0x35   :  { %494 = vmatpush3.bf16.msra.mxu1 %v526_v7  ;;  %v341_v44 = vstv %s462_s16 }
  0x36   :  { %495 = vmatprep.subr.bf16.mxu1 %v613_v1  ;;  %v275_v46 = vstv %s450_s17 }
  0x37   :  { %v285_v57 = vstv %s740_s0 }
  0x38   :  { %v302_v58 = vstv %s742_s1 }
  0x39   :  { %496 = vmatpush3.bf16.msra.mxu1 %v527_v8  ;;  %v324_v59 = vstv %s744_s18 }
  0x3a   :  { %497 = vmatprep.subr.bf16.mxu1 %v613_v1  ;;  %v346_v60 = vstv %s746_s19 }
  0x3d   :  { %498 = vmatpush3.bf16.msra.mxu1 %v528_v9 }
  0x3e   :  { %499 = vmatprep.subr.bf16.mxu1 %v613_v1 }
  0x41   :  { %500 = vmatpush3.bf16.msra.mxu1 %v529_v10 }
  0x42   :  { %501 = vmatprep.subr.bf16.mxu1 %v613_v1 }
  0x45   :  { %502 = vmatpush3.bf16.msra.mxu1 %v530_v11 }
  0xeb   :  { %v131_v13 = vpop.f32.mrf.mxu0 }
  0xec   :  { %v132_v14 = vadd.f32 %v438_v12, %v131_v13 }
  0xed   :  { %v485_v15 = vpop.f32.mrf.mxu0 }
  0xee   :  { %vm137_vm2 = vcmp.ge.f32.partialorder %v132_v14, 0.0  ;;  %v138_v16 = vmul.f32 0.01, %v132_v14 }
  0xef   :  { %v134_v17 = vpop.f32.mrf.mxu0 }
  0xf0   :  { %v139_v18 = vsel %vm137_vm2, %v132_v14, %v138_v16 }
  0xf1   :  { %v486_v19 = vpop.f32.mrf.mxu0  ;;  %v140_v20 = vpack.c.bf16 %v139_v18, %v139_v18 }
  0xf2   :  { %v531_v19 = vld [vmem:[%s779_s9] sm:$0xff]  }
  0xf3   :  { %504 = vmatmul.mubr.bf16.vlgmr.msra.gmra.mxu1 %v140_v20  ;;  %508 = vmatpush3.bf16.msra.mxu0 %v531_v19 }
 0x1b3   :  { %v246_v28 = vpop.f32.mrf.mxu1 }
 0x1b4   :  { %v728_v29 = vadd.f32 %v441_v26, %v246_v28 }
 0x1b5   :  { %v505_v31 = vpop.f32.mrf.mxu1 }
 0x1b6   :  { %v257_v32 = vmul.f32 %v256_v27, %v728_v29  ;;  %v270_v35 = vmul.f32 %v269_v30, %v728_v29 }
 0x1b7   :  { %v249_v33 = vpop.f32.mrf.mxu1 }
 0x1b8   :  { %v259_v34 = vsel %vm258_vm3, %v257_v32, 0.0  ;;  %v271_v37 = vsel %vm258_vm3, %v270_v35, 0.0 }
 0x1b9   :  { %260 = vadd.xlane.f32.xlu0 %v259_v34  ;;  %v506_v36 = vpop.f32.mrf.mxu1 }
 0x1bd   :  { %272 = vadd.xlane.f32.xlu0 %v271_v37 }
 0x242   :  { %v261_v39 = vpop.xlane.xlu0 %260 }
 0x243   :  { %v264_v40 = vadd.f32 %v263_v38, %v261_v39  ;;  %v465_v39 = vld [vmem:[%s780_s10] ss:$0 sm:$0xff] }
 0x245   :  { %v265_v45 = vmax.f32 %v264_v40, 0.0 }
 0x246   :  { %v273_v48 = vpop.xlane.xlu0 %272 }
 0x247   :  { %v281_v49 = vmul.f32 %v280_v41, %v265_v45  ;;  %v298_v50 = vmul.f32 %v297_v42, %v265_v45  ;;  %v320_v51 = vmul.f32 %v319_v43, %v265_v45  ;;  %v342_v52 = vmul.f32 %v341_v44, %v265_v45 }
 0x248   :  { %v276_v56 = vadd.f32 %v275_v46, %v273_v48 }
 0x249   :  { %v283_v62 = vadd.f32 %v282_v47, %v281_v49  ;;  %v300_v63 = vadd.f32 %v299_v53, %v298_v50  ;;  %v322_v0 = vadd.f32 %v321_v54, %v320_v51  ;;  %v344_v1 = vadd.f32 %v343_v55, %v342_v52 }
 0x24a   :  { %v277_v61 = vmax.f32 %v276_v56, 0.0 }
 0x24c   :  { %v286_v2 = vmul.f32 %v285_v57, %v277_v61  ;;  %v303_v3 = vmul.f32 %v302_v58, %v277_v61  ;;  %v325_v4 = vmul.f32 %v324_v59, %v277_v61  ;;  %v347_v5 = vmul.f32 %v346_v60, %v277_v61 }
 0x24e   :  { %v287_v6 = vadd.f32 %v286_v2, %v283_v62  ;;  %v304_v7 = vadd.f32 %v303_v3, %v300_v63  ;;  %v326_v8 = vadd.f32 %v325_v4, %v322_v0  ;;  %v348_v9 = vadd.f32 %v347_v5, %v344_v1 }
 0x250   :  { %v456_v10 = vmul.f32 -1.442695, %v304_v7  ;;  %v460_v11 = vmul.f32 -1.442695, %v326_v8  ;;  %v464_v12 = vmul.f32 -1.442695, %v348_v9 }
 0x251   :  { %v452_v26 = vmul.f32 -1.442695, %v287_v6 }
 0x252   :  { %532 = vpow2.f32 %v456_v10 }
 0x253   :  { %534 = vpow2.f32 %v460_v11 }
 0x254   :  { %536 = vpow2.f32 %v464_v12 }
 0x25f   :  { %v533_v13 = vpop.eup %532 }
 0x260   :  { %v535_v14 = vpop.eup %534  ;;  %v308_v15 = vadd.f32 1.0, %v533_v13 }
 0x261   :  { %v537_v16 = vpop.eup %536  ;;  %v330_v17 = vadd.f32 1.0, %v535_v14 }
 0x262   :  { %v352_v18 = vadd.f32 1.0, %v537_v16  ;;  %538 = vrcp.f32 %v308_v15 }
 0x263   :  { %540 = vrcp.f32 %v330_v17 }
 0x264   :  { %542 = vrcp.f32 %v352_v18 }
 0x265   :  { %544 = vpow2.f32 %v452_v26 }
 0x26f   :  { %v539_v20 = vpop.eup %538 }
 0x270   :  { %v541_v21 = vpop.eup %540  ;;  %v311_v22 = vmul.f32 %v539_v20, %v728_v29 }
 0x271   :  { %v543_v23 = vpop.eup %542  ;;  %v333_v25 = vmul.f32 %v541_v21, %v728_v29 }
 0x272   :  { %v355_v24 = vmul.f32 %v543_v23, %v728_v29  ;;  %313 = vrot.lane.b32.xlu1 %v311_v22, %s615_s22  ;;  %v545_v27 = vpop.eup %544 }
 0x273   :  { %v291_v28 = vadd.f32 1.0, %v545_v27 }
 0x274   :  { %357 = vrot.lane.b32.xlu0 %v355_v24, %s616_s23 }
 0x275   :  { %546 = vrcp.f32 %v291_v28 }
 0x276   :  { %335 = vrot.lane.b32.xlu1 %v333_v25, %s617_s24 }
 0x282   :  { %v547_v30 = vpop.eup %546 }
 0x283   :  { %v294_v32 = vmul.f32 %v547_v30, %v728_v29 }
 0x2e4   :  { %v314_v31 = vpop.permute.xlu1 %313 }
 0x2e5   :  { %v316_v33 = vadd.f32 %v314_v31, %v294_v32 }
 0x2e6   :  { %v358_v36 = vpop.permute.xlu0 %357 }
 0x2e8   :  { %v336_v34 = vpop.permute.xlu1 %335 }
 0x2e9   :  { %v338_v35 = vadd.f32 %v336_v34, %v316_v33 }
 0x2eb   :  { %v360_v37 = vadd.f32 %v358_v36, %v338_v35 }
 0x2ed   :  { %v361_v38 = vpack.c.bf16 %v360_v37, %v360_v37 }
 0x2ef   :  { %510 = vmatmul.mubr.msk.bf16.vlgmr.msra.gmra.mxu0 %vm93_vm0, %v361_v38 }
 0x3af   :  { %v414_v40 = vpop.f32.mrf.mxu0 }
 0x3b0   :  { %v415_v41 = vadd.f32 %v465_v39, %v414_v40 }
 0x3b1   :  { %v511_v42 = vpop.f32.mrf.mxu0 }
 0x3b2   :  { %421 = vst.msk [vmem:[#allocation8] sm:$0xff] %vm420_vm4, %v415_v41 }
 0x3b3   :  { %v417_v29 = vpop.f32.mrf.mxu0 }
 0x3b4   :  { %595 = shalt.err (!%p592_p5)
}
 0x3b5   :  { %431 = dma.vmem_to_hbm [thread:$0]  %s429_s6, 128, %s781_s11, [#allocation3]   ;;  %v512_v43 = vpop.f32.mrf.mxu0 }
 0x3b6   :  { %608 = dma.done.wait [#allocation3], 128  }
 0x3b7   :  { %609 = vsyncadd [#allocation3], 4294967168 }
 0x3b8   :  { %435 = vsyncpa [#allocation3], 1 }
 0x3b9   :  { %436 = vsyncpa [#allocation4], 1 }
 0x3ba   :  { %437 = vsyncpa [#allocation6], 1 }

</bundles_post_ra>
